<compile_context>
chip_gen: v7x
topology: tpu7x:2x2x1
jax: 0.10.0
libtpu: 0.0.40
codegen_flags: <defaults>
</compile_context>

<pallas_src>
import jax
import jax.numpy as jnp
from jax.experimental import pallas as pl
from jax.experimental.pallas import tpu as pltpu

EMBED_DIM = 64
MLP_DIMS = (128, 64, 32)
BN_EPS = 1e-5
# 512 rows/tile: big enough to amortize the ~0.35us per-grid-step overhead and
# fill the MXU M dimension, small enough for every generation's VMEM budget
# and small enough that mid-size batches still split across both v7x cores.
TILE_B_MAX = 512


def _round_up(x, m):
    return (x + m - 1) // m * m


def _choose_tile_b(batch):
    """Balanced tiling: split the batch into ceil(B/TILE_B_MAX) equal tiles
    (rounded to a multiple of 8) to minimize padded rows."""
    n_tiles = -(-batch // TILE_B_MAX)
    tile = _round_up(-(-batch // n_tiles), 8)
    return min(TILE_B_MAX, tile)


def _neumf_kernel(
    ug_ref, ig_ref, um_ref, im_ref, bert_ref,          # [T, *] batch tiles (bf16)
    wp_ref, bp_ref,                                    # BERT projection (BN folded)
    w1u_ref, w1i_ref, w1b_ref, b1_ref,                 # MLP layer 1 (BN folded, concat split)
    w2_ref, b2_ref,                                    # MLP layer 2 (BN folded)
    w3_ref, b3_ref,                                    # MLP layer 3 (BN folded)
    wog_ref, wom_ref, bo_ref,                          # output layer (split row vectors, f32)
    out_ref,
):
    f32 = jnp.float32
    bf16 = jnp.bfloat16

    # --- GMF branch: elementwise product (f32 VPU math) ---
    gmf = ug_ref[...].astype(f32) * ig_ref[...].astype(f32)                 # [T, E]

    # --- BERT projection -> folded BN -> ReLU ---
    bert = jnp.dot(bert_ref[...], wp_ref[...], preferred_element_type=f32) + bp_ref[...]
    bert = jnp.maximum(bert, 0.0)                                           # [T, E]

    # --- MLP layer 1 on concat([user_mlp, item_mlp, bert]) ---
    # Concatenation avoided by splitting the [3E, H1] weight into 3 row blocks.
    h = (jnp.dot(um_ref[...], w1u_ref[...], preferred_element_type=f32)
         + jnp.dot(im_ref[...], w1i_ref[...], preferred_element_type=f32)
         + jnp.dot(bert.astype(bf16), w1b_ref[...], preferred_element_type=f32)
         + b1_ref[...])
    h = jnp.maximum(h, 0.0)                                                 # [T, 128]

    # --- MLP layers 2 and 3 ---
    h = jnp.dot(h.astype(bf16), w2_ref[...], preferred_element_type=f32) + b2_ref[...]
    h = jnp.maximum(h, 0.0)                                                 # [T, 64]
    h = jnp.dot(h.astype(bf16), w3_ref[...], preferred_element_type=f32) + b3_ref[...]
    h = jnp.maximum(h, 0.0)                                                 # [T, 32]

    # --- Output layer on concat([gmf, h]): VPU multiply + lane reduction ---
    # (no N=1 MXU matmul; output stays a [T, 1] column — tiny masked store)
    logit = (jnp.sum(gmf * wog_ref[...], axis=-1, keepdims=True)
             + jnp.sum(h * wom_ref[...], axis=-1, keepdims=True)
             + bo_ref[...])                                                 # [T, 1]
    out_ref[...] = jax.nn.sigmoid(logit)


def init_params(key, num_users, num_items, item_bert_dim,
                embedding_dim=EMBED_DIM, mlp_dims=MLP_DIMS):
    """Synthetic parameters matching the PyTorch module, with eval-mode BN
    folded into the preceding Linear layers and matmul operands cast to bf16."""
    ks = iter(jax.random.split(key, 64))
    E = embedding_dim

    def linear(fan_in, fan_out):
        bound = 1.0 / float(fan_in) ** 0.5
        w = jax.random.uniform(next(ks), (fan_in, fan_out), jnp.float32, -bound, bound)
        b = jax.random.uniform(next(ks), (1, fan_out), jnp.float32, -bound, bound)
        return w, b

    def bn(dim):
        # Freshly constructed BatchNorm1d (eval mode): gamma=1, beta=0, mean=0, var=1.
        return (jnp.ones((1, dim), jnp.float32), jnp.zeros((1, dim), jnp.float32),
                jnp.zeros((1, dim), jnp.float32), jnp.ones((1, dim), jnp.float32))

    def fold_bn(w, b, gamma, beta, mean, var):
        # ((x@w + b) - mean) / sqrt(var+eps) * gamma + beta == x@w' + b'
        s = gamma / jnp.sqrt(var + BN_EPS)
        return w * s, (b - mean) * s + beta

    p = {}
    # Embedding tables stored in bf16 — halves gather + kernel-input HBM traffic.
    for name, n in (("user_gmf", num_users), ("item_gmf", num_items),
                    ("user_mlp", num_users), ("item_mlp", num_items)):
        p[name] = jax.random.normal(next(ks), (n, E), jnp.float32).astype(jnp.bfloat16)

    wp, bp = linear(item_bert_dim, E)
    wp, bp = fold_bn(wp, bp, *bn(E))
    p["wp"], p["bp"] = wp.astype(jnp.bfloat16), bp

    dims = (3 * E,) + tuple(mlp_dims)
    for i in range(len(mlp_dims)):
        w, b = linear(dims[i], dims[i + 1])
        w, b = fold_bn(w, b, *bn(dims[i + 1]))
        if i == 0:
            p["w1u"] = w[:E].astype(jnp.bfloat16)          # user_mlp rows
            p["w1i"] = w[E:2 * E].astype(jnp.bfloat16)     # item_mlp rows
            p["w1b"] = w[2 * E:].astype(jnp.bfloat16)      # bert rows
            p["b1"] = b
        else:
            p[f"w{i + 1}"] = w.astype(jnp.bfloat16)
            p[f"b{i + 1}"] = b

    wo, bo = linear(mlp_dims[-1] + E, 1)
    # Output layer kept in f32 as row vectors for the VPU mul + lane-reduce path.
    p["wog"] = wo[:E].T            # [1, E]   (gmf part of the concat)
    p["wom"] = wo[E:].T            # [1, H3]  (mlp part of the concat)
    p["bo"] = bo                   # [1, 1]
    return p


def neumf_forward(params, user_indices, item_indices, item_bert_emb,
                  embedding_dim=EMBED_DIM, mlp_dims=MLP_DIMS):
    B = user_indices.shape[0]
    Kb = item_bert_emb.shape[1]
    E = embedding_dim
    H1, H2, H3 = mlp_dims

    tile_b = _choose_tile_b(B)
    B_pad = _round_up(B, tile_b)
    pad = B_pad - B

    ui = jnp.pad(user_indices, (0, pad))                       # padded rows reuse index 0
    ii = jnp.pad(item_indices, (0, pad))
    bert = jnp.pad(item_bert_emb.astype(jnp.bfloat16), ((0, pad), (0, 0)))

    # Embedding gathers stay in plain JAX (bf16 tables halve their traffic).
    ug = params["user_gmf"][ui]
    ig = params["item_gmf"][ii]
    um = params["user_mlp"][ui]
    im = params["item_mlp"][ii]

    def batch_spec(feat):
        return pl.BlockSpec((tile_b, feat), lambda i: (i, 0))

    def resident(shape):
        # Constant block index -> DMA'd once, stays VMEM-resident across the grid.
        return pl.BlockSpec(shape, lambda i: (0, 0))

    in_specs = [
        batch_spec(E), batch_spec(E), batch_spec(E), batch_spec(E), batch_spec(Kb),
        resident((Kb, E)), resident((1, E)),
        resident((E, H1)), resident((E, H1)), resident((E, H1)), resident((1, H1)),
        resident((H1, H2)), resident((1, H2)),
        resident((H2, H3)), resident((1, H3)),
        resident((1, E)), resident((1, H3)), resident((1, 1)),
    ]
    args = (
        ug, ig, um, im, bert,
        params["wp"], params["bp"],
        params["w1u"], params["w1i"], params["w1b"], params["b1"],
        params["w2"], params["b2"],
        params["w3"], params["b3"],
        params["wog"], params["wom"], params["bo"],
    )

    # Advisory cost hint for XLA's scheduler around the custom call.
    mxu_flops = 2 * B_pad * (Kb * E + 3 * E * H1 + H1 * H2 + H2 * H3)
    weight_bytes = 2 * (Kb * E + 3 * E * H1 + H1 * H2 + H2 * H3) \
        + 4 * (E + H1 + H2 + H3 + E + H3 + 1)
    cost = pl.CostEstimate(
        flops=mxu_flops + 8 * B_pad * (E + H1 + H2 + H3),
        transcendentals=B_pad,
        bytes_accessed=B_pad * ((4 * E + Kb) * 2 + 4) + weight_bytes,
    )

    out = pl.pallas_call(
        _neumf_kernel,
        out_shape=jax.ShapeDtypeStruct((B_pad, 1), jnp.float32),
        grid=(B_pad // tile_b,),
        in_specs=in_specs,
        out_specs=pl.BlockSpec((tile_b, 1), lambda i: (i, 0)),
        compiler_params=pltpu.CompilerParams(
            dimension_semantics=("parallel",)),
        cost_estimate=cost,
    )(*args)
    return out[:B, 0]  # == prediction.squeeze()


def neumf_reference(params, user_indices, item_indices, item_bert_emb):
    """Pure-JAX reference with the same (bf16-storage, f32-accumulate) precision."""
    f32, bf16 = jnp.float32, jnp.bfloat16
    ug = params["user_gmf"][user_indices].astype(f32)
    ig = params["item_gmf"][item_indices].astype(f32)
    um = params["user_mlp"][user_indices]
    im = params["item_mlp"][item_indices]
    gmf = ug * ig
    bert = jnp.dot(item_bert_emb.astype(bf16), params["wp"],
                   preferred_element_type=f32) + params["bp"]
    bert = jnp.maximum(bert, 0.0)
    h = (jnp.dot(um, params["w1u"], preferred_element_type=f32)
         + jnp.dot(im, params["w1i"], preferred_element_type=f32)
         + jnp.dot(bert.astype(bf16), params["w1b"], preferred_element_type=f32)
         + params["b1"])
    h = jnp.maximum(h, 0.0)
    h = jnp.maximum(jnp.dot(h.astype(bf16), params["w2"],
                            preferred_element_type=f32) + params["b2"], 0.0)
    h = jnp.maximum(jnp.dot(h.astype(bf16), params["w3"],
                            preferred_element_type=f32) + params["b3"], 0.0)
    logit = (jnp.sum(gmf * params["wog"], axis=-1, keepdims=True)
             + jnp.sum(h * params["wom"], axis=-1, keepdims=True)
             + params["bo"])
    return jax.nn.sigmoid(logit)[:, 0]


if __name__ == "__main__":
    key = jax.random.PRNGKey(0)
    num_users, num_items, item_bert_dim = 50, 80, 96
    kp, kcase1, kcase2 = jax.random.split(key, 3)
    params = init_params(kp, num_users, num_items, item_bert_dim)

    def run_case(case_key, batch):
        k1, k2, k3 = jax.random.split(case_key, 3)
        user_idx = jax.random.randint(k1, (batch,), 0, num_users)
        item_idx = jax.random.randint(k2, (batch,), 0, num_items)
        item_bert = jax.random.normal(k3, (batch, item_bert_dim), jnp.float32)
        pred = neumf_forward(params, user_idx, item_idx, item_bert)
        jax.block_until_ready(pred)
        ref = neumf_reference(params, user_idx, item_idx, item_bert)
        assert pred.shape == (batch,)
        assert jnp.allclose(pred, ref, atol=1e-3, rtol=1e-3), \
            float(jnp.max(jnp.abs(pred - ref)))

    run_case(kcase1, 8)     # single 8-row tile, batch < TILE_B_MAX
    run_case(kcase2, 777)   # multi-step grid: balanced 2 x 392 tiles + 7 padded rows
    print("KERNEL_OK")
</pallas_src>

<mosaic_0001>
module attributes {stable_mosaic.version = 11 : i64} {
  func.func @_neumf_kernel(%arg0: i32, %arg1: memref<8x64xbf16, #tpu.memory_space<vmem>>, %arg2: memref<8x64xbf16, #tpu.memory_space<vmem>>, %arg3: memref<8x64xbf16, #tpu.memory_space<vmem>>, %arg4: memref<8x64xbf16, #tpu.memory_space<vmem>>, %arg5: memref<8x96xbf16, #tpu.memory_space<vmem>>, %arg6: memref<96x64xbf16, #tpu.memory_space<vmem>>, %arg7: memref<1x64xf32, #tpu.memory_space<vmem>>, %arg8: memref<64x128xbf16, #tpu.memory_space<vmem>>, %arg9: memref<64x128xbf16, #tpu.memory_space<vmem>>, %arg10: memref<64x128xbf16, #tpu.memory_space<vmem>>, %arg11: memref<1x128xf32, #tpu.memory_space<vmem>>, %arg12: memref<128x64xbf16, #tpu.memory_space<vmem>>, %arg13: memref<1x64xf32, #tpu.memory_space<vmem>>, %arg14: memref<64x32xbf16, #tpu.memory_space<vmem>>, %arg15: memref<1x32xf32, #tpu.memory_space<vmem>>, %arg16: memref<1x64xf32, #tpu.memory_space<vmem>>, %arg17: memref<1x32xf32, #tpu.memory_space<vmem>>, %arg18: memref<1x1xf32, #tpu.memory_space<vmem>>, %arg19: memref<8x1xf32, #tpu.memory_space<vmem>>) attributes {dimension_semantics = [#tpu.dimension_semantics<parallel>], iteration_bounds = array<i64: 1>, scalar_prefetch = 0 : i64, scratch_operands = 0 : i64, tpu.core_type = #tpu.core_type<tc>, window_params = [{transform_indices = @transform_0, window_bounds = array<i64: 8, 64>}, {transform_indices = @transform_1, window_bounds = array<i64: 8, 64>}, {transform_indices = @transform_2, window_bounds = array<i64: 8, 64>}, {transform_indices = @transform_3, window_bounds = array<i64: 8, 64>}, {transform_indices = @transform_4, window_bounds = array<i64: 8, 96>}, {pipeline_mode = #tpu.pipeline_mode<synchronous>, transform_indices = @transform_5, window_bounds = array<i64: 96, 64>}, {pipeline_mode = #tpu.pipeline_mode<synchronous>, transform_indices = @transform_6, window_bounds = array<i64: 1, 64>}, {pipeline_mode = #tpu.pipeline_mode<synchronous>, transform_indices = @transform_7, window_bounds = array<i64: 64, 128>}, {pipeline_mode = #tpu.pipeline_mode<synchronous>, transform_indices = @transform_8, window_bounds = array<i64: 64, 128>}, {pipeline_mode = #tpu.pipeline_mode<synchronous>, transform_indices = @transform_9, window_bounds = array<i64: 64, 128>}, {pipeline_mode = #tpu.pipeline_mode<synchronous>, transform_indices = @transform_10, window_bounds = array<i64: 1, 128>}, {pipeline_mode = #tpu.pipeline_mode<synchronous>, transform_indices = @transform_11, window_bounds = array<i64: 128, 64>}, {pipeline_mode = #tpu.pipeline_mode<synchronous>, transform_indices = @transform_12, window_bounds = array<i64: 1, 64>}, {pipeline_mode = #tpu.pipeline_mode<synchronous>, transform_indices = @transform_13, window_bounds = array<i64: 64, 32>}, {pipeline_mode = #tpu.pipeline_mode<synchronous>, transform_indices = @transform_14, window_bounds = array<i64: 1, 32>}, {pipeline_mode = #tpu.pipeline_mode<synchronous>, transform_indices = @transform_15, window_bounds = array<i64: 1, 64>}, {pipeline_mode = #tpu.pipeline_mode<synchronous>, transform_indices = @transform_16, window_bounds = array<i64: 1, 32>}, {pipeline_mode = #tpu.pipeline_mode<synchronous>, transform_indices = @transform_17, window_bounds = array<i64: 1, 1>}, {transform_indices = @transform_18, window_bounds = array<i64: 8, 1>}]} {
    %c0 = arith.constant 0 : index
    %c0_0 = arith.constant 0 : index
    %0 = vector.load %arg1[%c0, %c0_0] : memref<8x64xbf16, #tpu.memory_space<vmem>>, vector<8x64xbf16>
    %1 = arith.extf %0 : vector<8x64xbf16> to vector<8x64xf32>
    %c0_1 = arith.constant 0 : index
    %c0_2 = arith.constant 0 : index
    %2 = vector.load %arg2[%c0_1, %c0_2] : memref<8x64xbf16, #tpu.memory_space<vmem>>, vector<8x64xbf16>
    %3 = arith.extf %2 : vector<8x64xbf16> to vector<8x64xf32>
    %4 = arith.mulf %1, %3 : vector<8x64xf32>
    %c0_3 = arith.constant 0 : index
    %c0_4 = arith.constant 0 : index
    %5 = vector.load %arg5[%c0_3, %c0_4] : memref<8x96xbf16, #tpu.memory_space<vmem>>, vector<8x96xbf16>
    %c0_5 = arith.constant 0 : index
    %c0_6 = arith.constant 0 : index
    %6 = vector.load %arg6[%c0_5, %c0_6] : memref<96x64xbf16, #tpu.memory_space<vmem>>, vector<96x64xbf16>
    %cst = arith.constant dense<0.000000e+00> : vector<8x64xf32>
    %7 = tpu.matmul %5, %6, %cst {dimension_numbers = #tpu.dot_dimension_numbers<[1], [0], [0], [1], [0, 0, 1, 1], [], []>} : vector<8x96xbf16>, vector<96x64xbf16>, vector<8x64xf32> -> vector<8x64xf32>
    %c0_7 = arith.constant 0 : index
    %c0_8 = arith.constant 0 : index
    %8 = vector.load %arg7[%c0_7, %c0_8] : memref<1x64xf32, #tpu.memory_space<vmem>>, vector<1x64xf32>
    %9 = vector.broadcast %8 : vector<1x64xf32> to vector<8x64xf32>
    %10 = arith.addf %7, %9 : vector<8x64xf32>
    %cst_9 = arith.constant 0.000000e+00 : f32
    %11 = vector.broadcast %cst_9 : f32 to vector<8x64xf32>
    %12 = arith.maximumf %10, %11 : vector<8x64xf32>
    %c0_10 = arith.constant 0 : index
    %c0_11 = arith.constant 0 : index
    %13 = vector.load %arg3[%c0_10, %c0_11] : memref<8x64xbf16, #tpu.memory_space<vmem>>, vector<8x64xbf16>
    %c0_12 = arith.constant 0 : index
    %c0_13 = arith.constant 0 : index
    %14 = vector.load %arg8[%c0_12, %c0_13] : memref<64x128xbf16, #tpu.memory_space<vmem>>, vector<64x128xbf16>
    %cst_14 = arith.constant dense<0.000000e+00> : vector<8x128xf32>
    %15 = tpu.matmul %13, %14, %cst_14 {dimension_numbers = #tpu.dot_dimension_numbers<[1], [0], [0], [1], [0, 0, 1, 1], [], []>} : vector<8x64xbf16>, vector<64x128xbf16>, vector<8x128xf32> -> vector<8x128xf32>
    %c0_15 = arith.constant 0 : index
    %c0_16 = arith.constant 0 : index
    %16 = vector.load %arg4[%c0_15, %c0_16] : memref<8x64xbf16, #tpu.memory_space<vmem>>, vector<8x64xbf16>
    %c0_17 = arith.constant 0 : index
    %c0_18 = arith.constant 0 : index
    %17 = vector.load %arg9[%c0_17, %c0_18] : memref<64x128xbf16, #tpu.memory_space<vmem>>, vector<64x128xbf16>
    %cst_19 = arith.constant dense<0.000000e+00> : vector<8x128xf32>
    %18 = tpu.matmul %16, %17, %cst_19 {dimension_numbers = #tpu.dot_dimension_numbers<[1], [0], [0], [1], [0, 0, 1, 1], [], []>} : vector<8x64xbf16>, vector<64x128xbf16>, vector<8x128xf32> -> vector<8x128xf32>
    %19 = arith.addf %15, %18 : vector<8x128xf32>
    %20 = arith.truncf %12 : vector<8x64xf32> to vector<8x64xbf16>
    %c0_20 = arith.constant 0 : index
    %c0_21 = arith.constant 0 : index
    %21 = vector.load %arg10[%c0_20, %c0_21] : memref<64x128xbf16, #tpu.memory_space<vmem>>, vector<64x128xbf16>
    %cst_22 = arith.constant dense<0.000000e+00> : vector<8x128xf32>
    %22 = tpu.matmul %20, %21, %cst_22 {dimension_numbers = #tpu.dot_dimension_numbers<[1], [0], [0], [1], [0, 0, 1, 1], [], []>} : vector<8x64xbf16>, vector<64x128xbf16>, vector<8x128xf32> -> vector<8x128xf32>
    %23 = arith.addf %19, %22 : vector<8x128xf32>
    %c0_23 = arith.constant 0 : index
    %c0_24 = arith.constant 0 : index
    %24 = vector.load %arg11[%c0_23, %c0_24] : memref<1x128xf32, #tpu.memory_space<vmem>>, vector<1x128xf32>
    %25 = vector.broadcast %24 : vector<1x128xf32> to vector<8x128xf32>
    %26 = arith.addf %23, %25 : vector<8x128xf32>
    %cst_25 = arith.constant 0.000000e+00 : f32
    %27 = vector.broadcast %cst_25 : f32 to vector<8x128xf32>
    %28 = arith.maximumf %26, %27 : vector<8x128xf32>
    %29 = arith.truncf %28 : vector<8x128xf32> to vector<8x128xbf16>
    %c0_26 = arith.constant 0 : index
    %c0_27 = arith.constant 0 : index
    %30 = vector.load %arg12[%c0_26, %c0_27] : memref<128x64xbf16, #tpu.memory_space<vmem>>, vector<128x64xbf16>
    %cst_28 = arith.constant dense<0.000000e+00> : vector<8x64xf32>
    %31 = tpu.matmul %29, %30, %cst_28 {dimension_numbers = #tpu.dot_dimension_numbers<[1], [0], [0], [1], [0, 0, 1, 1], [], []>} : vector<8x128xbf16>, vector<128x64xbf16>, vector<8x64xf32> -> vector<8x64xf32>
    %c0_29 = arith.constant 0 : index
    %c0_30 = arith.constant 0 : index
    %32 = vector.load %arg13[%c0_29, %c0_30] : memref<1x64xf32, #tpu.memory_space<vmem>>, vector<1x64xf32>
    %33 = vector.broadcast %32 : vector<1x64xf32> to vector<8x64xf32>
    %34 = arith.addf %31, %33 : vector<8x64xf32>
    %cst_31 = arith.constant 0.000000e+00 : f32
    %35 = vector.broadcast %cst_31 : f32 to vector<8x64xf32>
    %36 = arith.maximumf %34, %35 : vector<8x64xf32>
    %37 = arith.truncf %36 : vector<8x64xf32> to vector<8x64xbf16>
    %c0_32 = arith.constant 0 : index
    %c0_33 = arith.constant 0 : index
    %38 = vector.load %arg14[%c0_32, %c0_33] : memref<64x32xbf16, #tpu.memory_space<vmem>>, vector<64x32xbf16>
    %cst_34 = arith.constant dense<0.000000e+00> : vector<8x32xf32>
    %39 = tpu.matmul %37, %38, %cst_34 {dimension_numbers = #tpu.dot_dimension_numbers<[1], [0], [0], [1], [0, 0, 1, 1], [], []>} : vector<8x64xbf16>, vector<64x32xbf16>, vector<8x32xf32> -> vector<8x32xf32>
    %c0_35 = arith.constant 0 : index
    %c0_36 = arith.constant 0 : index
    %40 = vector.load %arg15[%c0_35, %c0_36] : memref<1x32xf32, #tpu.memory_space<vmem>>, vector<1x32xf32>
    %41 = vector.broadcast %40 : vector<1x32xf32> to vector<8x32xf32>
    %42 = arith.addf %39, %41 : vector<8x32xf32>
    %cst_37 = arith.constant 0.000000e+00 : f32
    %43 = vector.broadcast %cst_37 : f32 to vector<8x32xf32>
    %44 = arith.maximumf %42, %43 : vector<8x32xf32>
    %c0_38 = arith.constant 0 : index
    %c0_39 = arith.constant 0 : index
    %45 = vector.load %arg16[%c0_38, %c0_39] : memref<1x64xf32, #tpu.memory_space<vmem>>, vector<1x64xf32>
    %46 = vector.broadcast %45 : vector<1x64xf32> to vector<8x64xf32>
    %47 = arith.mulf %4, %46 : vector<8x64xf32>
    %cst_40 = arith.constant dense<0.000000e+00> : vector<8xf32>
    %48 = vector.multi_reduction <add>, %47, %cst_40 [1] : vector<8x64xf32> to vector<8xf32>
    %49 = vector.shape_cast %48 : vector<8xf32> to vector<8x1xf32>
    %c0_41 = arith.constant 0 : index
    %c0_42 = arith.constant 0 : index
    %50 = vector.load %arg17[%c0_41, %c0_42] : memref<1x32xf32, #tpu.memory_space<vmem>>, vector<1x32xf32>
    %51 = vector.broadcast %50 : vector<1x32xf32> to vector<8x32xf32>
    %52 = arith.mulf %44, %51 : vector<8x32xf32>
    %cst_43 = arith.constant dense<0.000000e+00> : vector<8xf32>
    %53 = vector.multi_reduction <add>, %52, %cst_43 [1] : vector<8x32xf32> to vector<8xf32>
    %54 = vector.shape_cast %53 : vector<8xf32> to vector<8x1xf32>
    %55 = arith.addf %49, %54 : vector<8x1xf32>
    %c0_44 = arith.constant 0 : index
    %c0_45 = arith.constant 0 : index
    %56 = vector.load %arg18[%c0_44, %c0_45] : memref<1x1xf32, #tpu.memory_space<vmem>>, vector<1x1xf32>
    %57 = vector.broadcast %56 : vector<1x1xf32> to vector<8x1xf32>
    %58 = arith.addf %55, %57 : vector<8x1xf32>
    %59 = arith.negf %58 : vector<8x1xf32>
    %60 = math.exp %59 : vector<8x1xf32>
    %cst_46 = arith.constant 1.000000e+00 : f32
    %61 = vector.broadcast %cst_46 : f32 to vector<8x1xf32>
    %62 = arith.addf %61, %60 : vector<8x1xf32>
    %63 = arith.divf %61, %62 : vector<8x1xf32>
    %c0_47 = arith.constant 0 : index
    %c0_48 = arith.constant 0 : index
    %64 = vector.load %arg19[%c0_47, %c0_48] : memref<8x1xf32, #tpu.memory_space<vmem>>, vector<8x1xf32>
    tpu.vector_store %arg19[%c0_47, %c0_48], %63 {strides = array<i32>} : memref<8x1xf32, #tpu.memory_space<vmem>>, vector<8x1xf32>,
    return
  }
  func.func @transform_0(%arg0: i32) -> (i32, i32) {
    %c0_i32 = arith.constant 0 : i32
    %c0_i32_0 = arith.constant 0 : i32
    return %arg0, %c0_i32 : i32, i32
  }
  func.func @transform_1(%arg0: i32) -> (i32, i32) {
    %c0_i32 = arith.constant 0 : i32
    %c0_i32_0 = arith.constant 0 : i32
    return %arg0, %c0_i32 : i32, i32
  }
  func.func @transform_2(%arg0: i32) -> (i32, i32) {
    %c0_i32 = arith.constant 0 : i32
    %c0_i32_0 = arith.constant 0 : i32
    return %arg0, %c0_i32 : i32, i32
  }
  func.func @transform_3(%arg0: i32) -> (i32, i32) {
    %c0_i32 = arith.constant 0 : i32
    %c0_i32_0 = arith.constant 0 : i32
    return %arg0, %c0_i32 : i32, i32
  }
  func.func @transform_4(%arg0: i32) -> (i32, i32) {
    %c0_i32 = arith.constant 0 : i32
    %c0_i32_0 = arith.constant 0 : i32
    return %arg0, %c0_i32 : i32, i32
  }
  func.func @transform_5(%arg0: i32) -> (i32, i32) {
    %c0_i32 = arith.constant 0 : i32
    %c0_i32_0 = arith.constant 0 : i32
    %c0_i32_1 = arith.constant 0 : i32
    return %c0_i32, %c0_i32_0 : i32, i32
  }
  func.func @transform_6(%arg0: i32) -> (i32, i32) {
    %c0_i32 = arith.constant 0 : i32
    %c0_i32_0 = arith.constant 0 : i32
    %c0_i32_1 = arith.constant 0 : i32
    return %c0_i32, %c0_i32_0 : i32, i32
  }
  func.func @transform_7(%arg0: i32) -> (i32, i32) {
    %c0_i32 = arith.constant 0 : i32
    %c0_i32_0 = arith.constant 0 : i32
    %c0_i32_1 = arith.constant 0 : i32
    return %c0_i32, %c0_i32_0 : i32, i32
  }
  func.func @transform_8(%arg0: i32) -> (i32, i32) {
    %c0_i32 = arith.constant 0 : i32
    %c0_i32_0 = arith.constant 0 : i32
    %c0_i32_1 = arith.constant 0 : i32
    return %c0_i32, %c0_i32_0 : i32, i32
  }
  func.func @transform_9(%arg0: i32) -> (i32, i32) {
    %c0_i32 = arith.constant 0 : i32
    %c0_i32_0 = arith.constant 0 : i32
    %c0_i32_1 = arith.constant 0 : i32
    return %c0_i32, %c0_i32_0 : i32, i32
  }
  func.func @transform_10(%arg0: i32) -> (i32, i32) {
    %c0_i32 = arith.constant 0 : i32
    %c0_i32_0 = arith.constant 0 : i32
    %c0_i32_1 = arith.constant 0 : i32
    return %c0_i32, %c0_i32_0 : i32, i32
  }
  func.func @transform_11(%arg0: i32) -> (i32, i32) {
    %c0_i32 = arith.constant 0 : i32
    %c0_i32_0 = arith.constant 0 : i32
    %c0_i32_1 = arith.constant 0 : i32
    return %c0_i32, %c0_i32_0 : i32, i32
  }
  func.func @transform_12(%arg0: i32) -> (i32, i32) {
    %c0_i32 = arith.constant 0 : i32
    %c0_i32_0 = arith.constant 0 : i32
    %c0_i32_1 = arith.constant 0 : i32
    return %c0_i32, %c0_i32_0 : i32, i32
  }
  func.func @transform_13(%arg0: i32) -> (i32, i32) {
    %c0_i32 = arith.constant 0 : i32
    %c0_i32_0 = arith.constant 0 : i32
    %c0_i32_1 = arith.constant 0 : i32
    return %c0_i32, %c0_i32_0 : i32, i32
  }
  func.func @transform_14(%arg0: i32) -> (i32, i32) {
    %c0_i32 = arith.constant 0 : i32
    %c0_i32_0 = arith.constant 0 : i32
    %c0_i32_1 = arith.constant 0 : i32
    return %c0_i32, %c0_i32_0 : i32, i32
  }
  func.func @transform_15(%arg0: i32) -> (i32, i32) {
    %c0_i32 = arith.constant 0 : i32
    %c0_i32_0 = arith.constant 0 : i32
    %c0_i32_1 = arith.constant 0 : i32
    return %c0_i32, %c0_i32_0 : i32, i32
  }
  func.func @transform_16(%arg0: i32) -> (i32, i32) {
    %c0_i32 = arith.constant 0 : i32
    %c0_i32_0 = arith.constant 0 : i32
    %c0_i32_1 = arith.constant 0 : i32
    return %c0_i32, %c0_i32_0 : i32, i32
  }
  func.func @transform_17(%arg0: i32) -> (i32, i32) {
    %c0_i32 = arith.constant 0 : i32
    %c0_i32_0 = arith.constant 0 : i32
    %c0_i32_1 = arith.constant 0 : i32
    return %c0_i32, %c0_i32_0 : i32, i32
  }
  func.func @transform_18(%arg0: i32) -> (i32, i32) {
    %c0_i32 = arith.constant 0 : i32
    %c0_i32_0 = arith.constant 0 : i32
    return %arg0, %c0_i32 : i32, i32
  }
}

</mosaic_0001>

<bundles_post_ra>
// kernel: tpu_custom_call.1
= control target key start
LH: loop header
LB: loop body
LE: loop exit
PB: predicated region body
PF: predicated region fallthrough
CT: control target
= control target key end

     0   :  { %v847_v0 = vmov 0.0   ;;  %vm848_vm0 = vmmov 0   ;;  %vm210_vm1 = vcmask 523264   ;;  %vm123_vm2 = vcmask 785408   ;;  %s1120_s5 = inlined_call_operand.vmem [shape: bf16[96,64], index: 5, kind: input, shape index: {}]   ;;  %s1121_s8 = inlined_call_operand.vmem [shape: bf16[64,128], index: 8, kind: input, shape index: {}]   ;;  %s1122_s7 = inlined_call_operand.vmem [shape: bf16[64,128], index: 7, kind: input, shape index: {}]   ;;  %s1123_s9 = inlined_call_operand.vmem [shape: bf16[64,128], index: 9, kind: input, shape index: {}]   ;;  %s1124_s3 = inlined_call_operand.vmem [shape: bf16[8,64], index: 3, kind: input, shape index: {}]   ;;  %s1125_s4 = inlined_call_operand.vmem [shape: bf16[8,96], index: 4, kind: input, shape index: {}]   ;;  %s1126_s2 = inlined_call_operand.vmem [shape: bf16[8,64], index: 2, kind: input, shape index: {}]   ;;  %s1127_s11 = inlined_call_operand.vmem [shape: bf16[128,64], index: 11, kind: input, shape index: {}]   ;;  %s1128_s6 = inlined_call_operand.vmem [shape: f32[1,64], index: 6, kind: input, shape index: {}]   ;;  %s1129_s13 = inlined_call_operand.vmem [shape: bf16[64,32], index: 13, kind: input, shape index: {}]   ;;  %s1130_s10 = inlined_call_operand.vmem [shape: f32[1,128], index: 10, kind: input, shape index: {}]   ;;  %s1131_s12 = inlined_call_operand.vmem [shape: f32[1,64], index: 12, kind: input, shape index: {}]   ;;  %s1132_s0 = inlined_call_operand.vmem [shape: bf16[8,64], index: 0, kind: input, shape index: {}]   ;;  %s1133_s1 = inlined_call_operand.vmem [shape: bf16[8,64], index: 1, kind: input, shape index: {}]   ;;  %s1134_s15 = inlined_call_operand.vmem [shape: f32[1,64], index: 15, kind: input, shape index: {}]   ;;  %s1135_s17 = inlined_call_operand.<no memory space> [shape: f32[1,1], index: 17, kind: input, shape index: {}]   ;;  %s1136_s14 = inlined_call_operand.vmem [shape: f32[1,32], index: 14, kind: input, shape index: {}]   ;;  %s1137_s16 = inlined_call_operand.vmem [shape: f32[1,32], index: 16, kind: input, shape index: {}]   ;;  %s1138_s18 = inlined_call_operand.vmem [shape: f32[8,1], index: 18, kind: output, shape index: {}]  }
   0x1   :  { %1142 = sst [smem:[#allocation3_spill]] %s1120_s5  ;;  %727 = vmatprep.subr.bf16.mxu0 %v847_v0  ;;  %739 = vmatprep.mubr.msk.bf16.mxu0 %vm848_vm0, %v847_v0  ;;  %v177_v11 = vld [vmem:[%s1124_s3] sm:$0xf]  ;;  %v828_v16 = vld [vmem:[%s1123_s9 + $0x8] sm:$0xff]   ;;  %v829_v20 = vld [vmem:[%s1123_s9 + $0x10] sm:$0xff]   ;;  %vm623_vm3 = vcmask 261120  }
   0x2   :  { %1143 = sst [smem:[#allocation4_spill]] %s1121_s8  ;;  %s1145_s29 = sld [smem:[#allocation3_spill]]  ;;  %743 = vmatprep.subr.bf16.mxu1 %v847_v0  ;;  %751 = vmatprep.mubr.msk.bf16.mxu1 %vm848_vm0, %v847_v0  ;;  %v67_v13 = vld [vmem:[%s1125_s4] sm:$0xf]  ;;  %v830_v21 = vld [vmem:[%s1123_s9 + $0x18] sm:$0xff]   ;;  %v832_v23 = vld [vmem:[%s1127_s11 + $0x8] sm:$0xff]  }
   0x3   :  { %1144 = sst [smem:[#allocation5_spill]] %s1122_s7  ;;  %s1146_s22 = sld [smem:[#allocation4_spill]]  ;;  %v827_v14 = vld [vmem:[%s1123_s9] sm:$0xff]   ;;  %v833_v24 = vld [vmem:[%s1127_s11 + $0x10] sm:$0xff]   ;;  %v834_v25 = vld [vmem:[%s1127_s11 + $0x18] sm:$0xff]   ;;  %vm642_vm4 = vcmask 7168  }
   0x4   :  { %s1147_s25 = sld [smem:[#allocation5_spill]]  ;;  %v168_v19 = vld [vmem:[%s1126_s2] sm:$0xf]  ;;  %v836_v27 = vld [vmem:[%s1127_s11 + $0x28] sm:$0xff]   ;;  %v837_v45 = vld [vmem:[%s1127_s11 + $0x30] sm:$0xff]  }
   0x5   :  { %v831_v22 = vld [vmem:[%s1127_s11] sm:$0xff]   ;;  %v838_v46 = vld [vmem:[%s1127_s11 + $0x38] sm:$0xff]   ;;  %v840_v48 = vld [vmem:[%s1129_s13 + $0x8] sm:$0xff]  }
   0x6   :  { %v835_v26 = vld [vmem:[%s1127_s11 + $0x20] sm:$0xff]   ;;  %v841_v58 = vld [vmem:[%s1129_s13 + $0x10] sm:$0xff]   ;;  %v842_v59 = vld [vmem:[%s1129_s13 + $0x18] sm:$0xff]  }
   0x7   :  { %v648_v28 = vld [vmem:[%s1128_s6] ss:$0 sm:$0xff] }
   0x8   :  { %v813_v1 = vld [vmem:[%s1145_s29] sm:$0xff]   ;;  %v814_v2 = vld [vmem:[%s1145_s29 + $0x8] sm:$0xff]   ;;  %v815_v3 = vld [vmem:[%s1145_s29 + $0x10] sm:$0xff]  }
   0x9   :  { %728 = vmatpush3.bf16.msra.mxu0 %v813_v1  ;;  %v819_v4 = vld [vmem:[%s1146_s22] sm:$0xff]   ;;  %v820_v5 = vld [vmem:[%s1146_s22 + $0x8] sm:$0xff]   ;;  %v816_v6 = vld [vmem:[%s1145_s29 + $0x18] sm:$0xff]  }
   0xa   :  { %729 = vmatprep.subr.bf16.mxu0 %v847_v0  ;;  %744 = vmatpush3.bf16.msra.mxu1 %v819_v4  ;;  %v821_v7 = vld [vmem:[%s1146_s22 + $0x10] sm:$0xff]   ;;  %v817_v8 = vld [vmem:[%s1145_s29 + $0x20] sm:$0xff]   ;;  %v822_v9 = vld [vmem:[%s1146_s22 + $0x18] sm:$0xff]  }
   0xb   :  { %745 = vmatprep.subr.bf16.mxu1 %v847_v0  ;;  %v818_v10 = vld [vmem:[%s1145_s29 + $0x28] sm:$0xff]   ;;  %v823_v12 = vld [vmem:[%s1147_s25] sm:$0xff]   ;;  %v825_v17 = vld [vmem:[%s1147_s25 + $0x10] sm:$0xff]  }
   0xc   :  { %v824_v15 = vld [vmem:[%s1147_s25 + $0x8] sm:$0xff]   ;;  %v826_v18 = vld [vmem:[%s1147_s25 + $0x18] sm:$0xff]   ;;  %v839_v47 = vld [vmem:[%s1129_s13] sm:$0xff]  }
   0xd   :  { %730 = vmatpush3.bf16.msra.mxu0 %v814_v2  ;;  %v671_v50 = vld [vmem:[%s1130_s10] ss:$0 sm:$0xff] }
   0xe   :  { %731 = vmatprep.subr.bf16.mxu0 %v847_v0  ;;  %746 = vmatpush3.bf16.msra.mxu1 %v820_v5  ;;  %v672_v60 = vld [vmem:[%s1131_s12] ss:$0 sm:$0xff] }
   0xf   :  { %747 = vmatprep.subr.bf16.mxu1 %v847_v0  ;;  %v64_v5 = vld [vmem:[%s1133_s1] sm:$0xf] }
  0x11   :  { %732 = vmatpush3.bf16.msra.mxu0 %v815_v3 }
  0x12   :  { %733 = vmatprep.subr.bf16.mxu0 %v847_v0  ;;  %748 = vmatpush3.bf16.msra.mxu1 %v821_v7  ;;  %v65_v7 = vunpack.c.l.bf16 %v64_v5 }
  0x13   :  { %749 = vmatprep.subr.bf16.mxu1 %v847_v0 }
  0x15   :  { %734 = vmatpush3.bf16.msra.mxu0 %v816_v6 }
  0x16   :  { %735 = vmatprep.subr.bf16.mxu0 %v847_v0  ;;  %750 = vmatpush3.bf16.msra.mxu1 %v822_v9  ;;  %v687_v9 = vld [vmem:[%s1134_s15] ss:$0 sm:$0xff] }
  0x17   :  { %755 = vmatprep.subr.bf16.mxu1 %v847_v0 }
  0x19   :  { %736 = vmatpush3.bf16.msra.mxu0 %v817_v8  ;;  %752 = vmatmul.mubr.msk.bf16.vlgmr.msra.gmra.mrb[0].mxu1 %vm210_vm1, %v177_v11 }
  0x1a   :  { %737 = vmatprep.subr.bf16.mxu0 %v847_v0  ;;  %756 = vmatpush3.bf16.msra.mxu1 %v823_v12  ;;  %v23_v12 = vstv %s1135_s17 }
  0x1b   :  { %757 = vmatprep.subr.bf16.mxu1 %v847_v0  ;;  %763 = vmatprep.mubr.msk.bf16.mxu1 %vm848_vm0, %v847_v0  ;;  %24 = vst [vmem:[#allocation2] sm:$0x1] %v23_v12 }
  0x1d   :  { %738 = vmatpush3.bf16.msra.mxu0 %v818_v10 }
  0x1e   :  { %767 = vmatprep.subr.bf16.mxu0 %v847_v0  ;;  %758 = vmatpush3.bf16.msra.mxu1 %v824_v15 }
  0x1f   :  { %759 = vmatprep.subr.bf16.mxu1 %v847_v0 }
  0x20   :  { %740 = vmatmul.mubr.msk.bf16.vlgmr.msra.gmra.mrb[0].mxu0 %vm123_vm2, %v67_v13  ;;  %v681_v13 = vld [vmem:[%s1136_s14] ss:$0 sm:$0xff] }
  0x21   :  { %768 = vmatpush3.bf16.msra.mxu0 %v827_v14  ;;  %775 = vmatprep.mubr.msk.bf16.mxu0 %vm848_vm0, %v847_v0 }
  0x22   :  { %769 = vmatprep.subr.bf16.mxu0 %v847_v0  ;;  %760 = vmatpush3.bf16.msra.mxu1 %v825_v17 }
  0x23   :  { %761 = vmatprep.subr.bf16.mxu1 %v847_v0 }
  0x25   :  { %770 = vmatpush3.bf16.msra.mxu0 %v828_v16 }
  0x26   :  { %771 = vmatprep.subr.bf16.mxu0 %v847_v0  ;;  %762 = vmatpush3.bf16.msra.mxu1 %v826_v18  ;;  %v688_v18 = vld [vmem:[%s1137_s16] ss:$0 sm:$0xff] }
  0x27   :  { %779 = vmatprep.subr.bf16.mxu1 %v847_v0 }
  0x29   :  { %764 = vmatmul.mubr.msk.bf16.vlgmr.msra.gmra.mrb[4].mxu1 %vm210_vm1, %v168_v19  ;;  %772 = vmatpush3.bf16.msra.mxu0 %v829_v20 }
  0x2a   :  { %795 = vmatprep.mubr.msk.bf16.mxu1 %vm848_vm0, %v847_v0  ;;  %773 = vmatprep.subr.bf16.mxu0 %v847_v0 }
  0x2b   :  { %780 = vmatpush3.bf16.msra.mxu1 %v831_v22 }
  0x2c   :  { %781 = vmatprep.subr.bf16.mxu1 %v847_v0 }
  0x2d   :  { %774 = vmatpush3.bf16.msra.mxu0 %v830_v21 }
  0x2e   :  { %799 = vmatprep.subr.bf16.mxu0 %v847_v0 }
  0x2f   :  { %782 = vmatpush3.bf16.msra.mxu1 %v832_v23 }
  0x30   :  { %783 = vmatprep.subr.bf16.mxu1 %v847_v0 }
  0x33   :  { %784 = vmatpush3.bf16.msra.mxu1 %v833_v24  ;;  %v689_v24 = vld [vmem:[#allocation2] ss:$0 sm:$0xff] }
  0x34   :  { %785 = vmatprep.subr.bf16.mxu1 %v847_v0 }
  0x37   :  { %786 = vmatpush3.bf16.msra.mxu1 %v834_v25 }
  0x38   :  { %787 = vmatprep.subr.bf16.mxu1 %v847_v0 }
  0x3b   :  { %788 = vmatpush3.bf16.msra.mxu1 %v835_v26 }
  0x3c   :  { %789 = vmatprep.subr.bf16.mxu1 %v847_v0 }
  0x3f   :  { %790 = vmatpush3.bf16.msra.mxu1 %v836_v27 }
  0x40   :  { %791 = vmatprep.subr.bf16.mxu1 %v847_v0 }
  0x43   :  { %792 = vmatpush3.bf16.msra.mxu1 %v837_v45 }
  0x44   :  { %793 = vmatprep.subr.bf16.mxu1 %v847_v0 }
  0x47   :  { %794 = vmatpush3.bf16.msra.mxu1 %v838_v46 }
  0xec   :  { %v248_v29 = vpop.f32.mrb[0].mxu1 }
  0xed   :  { %v753_v31 = vpop.f32.mrb[1].mxu1 }
  0xee   :  { %v251_v34 = vpop.f32.mrb[2].mxu1 }
  0xef   :  { %v754_v36 = vpop.f32.mrb[3].mxu1 }
  0xf3   :  { %v161_v30 = vpop.f32.mrb[0].mxu0 }
  0xf4   :  { %v162_v32 = vadd.f32 %v648_v28, %v161_v30  ;;  %v741_v33 = vpop.f32.mrb[1].mxu0 }
  0xf5   :  { %v164_v35 = vpop.f32.mrb[2].mxu0 }
  0xf6   :  { %v167_v37 = vmax.f32 %v162_v32, 0.0  ;;  %v742_v38 = vpop.f32.mrb[3].mxu0 }
  0xf8   :  { %v321_v39 = vpack.c.bf16 %v167_v37, %v167_v37 }
  0xfa   :  { %776 = vmatmul.mubr.msk.bf16.vlgmr.msra.gmra.mrb[4].mxu0 %vm210_vm1, %v321_v39 }
  0xfb   :  { %807 = vmatprep.mubr.msk.bf16.mxu0 %vm848_vm0, %v847_v0  ;;  %800 = vmatpush3.bf16.msra.mxu0 %v839_v47 }
  0xfc   :  { %v315_v40 = vpop.f32.mrb[4].mxu1  ;;  %801 = vmatprep.subr.bf16.mxu0 %v847_v0 }
  0xfd   :  { %v316_v41 = vadd.f32 %v315_v40, %v248_v29  ;;  %v765_v42 = vpop.f32.mrb[5].mxu1 }
  0xfe   :  { %v318_v43 = vpop.f32.mrb[6].mxu1 }
  0xff   :  { %v766_v44 = vpop.f32.mrb[7].mxu1  ;;  %802 = vmatpush3.bf16.msra.mxu0 %v840_v48 }
 0x100   :  { %803 = vmatprep.subr.bf16.mxu0 %v847_v0 }
 0x103   :  { %804 = vmatpush3.bf16.msra.mxu0 %v841_v58 }
 0x104   :  { %805 = vmatprep.subr.bf16.mxu0 %v847_v0  ;;  %v62_v0 = vld [vmem:[%s1132_s0] sm:$0xf] }
 0x105   :  { %v63_v6 = vunpack.c.l.bf16 %v62_v0 }
 0x107   :  { %806 = vmatpush3.bf16.msra.mxu0 %v842_v59  ;;  %v66_v8 = vmul.f32 %v65_v7, %v63_v6 }
 0x109   :  { %v611_v10 = vmul.f32 %v687_v9, %v66_v8 }
 0x10b   :  { %v612_v11 = vsel %vm210_vm1, %v611_v10, 0.0 }
 0x10c   :  { %613 = vadd.xlane.f32.xlu0 %v612_v11 }
 0x199   :  { %v614_v23 = vpop.xlane.xlu0 %613 }
 0x1cd   :  { %v391_v49 = vpop.f32.mrb[4].mxu0 }
 0x1ce   :  { %v397_v51 = vadd.f32 %v391_v49, %v316_v41  ;;  %v777_v52 = vpop.f32.mrb[5].mxu0 }
 0x1cf   :  { %v394_v53 = vpop.f32.mrb[6].mxu0 }
 0x1d0   :  { %v405_v54 = vadd.f32 %v671_v50, %v397_v51  ;;  %v778_v55 = vpop.f32.mrb[7].mxu0 }
 0x1d2   :  { %v406_v56 = vmax.f32 %v405_v54, 0.0 }
 0x1d4   :  { %v407_v57 = vpack.c.bf16 %v406_v56, %v406_v56 }
 0x1d6   :  { %796 = vmatmul.mubr.bf16.vlgmr.msra.gmra.mrb[8].mxu1 %v407_v57 }
 0x2a9   :  { %v513_v61 = vpop.f32.mrb[8].mxu1 }
 0x2aa   :  { %v514_v62 = vadd.f32 %v672_v60, %v513_v61  ;;  %v797_v63 = vpop.f32.mrb[9].mxu1 }
 0x2ab   :  { %v516_v1 = vpop.f32.mrb[10].mxu1 }
 0x2ac   :  { %v519_v2 = vmax.f32 %v514_v62, 0.0  ;;  %v798_v3 = vpop.f32.mrb[11].mxu1 }
 0x2ae   :  { %v520_v4 = vpack.c.bf16 %v519_v2, %v519_v2 }
 0x2b0   :  { %808 = vmatmul.mubr.msk.bf16.vlgmr.msra.gmra.mrb[8].mxu0 %vm210_vm1, %v520_v4 }
 0x383   :  { %v597_v14 = vpop.f32.mrb[8].mxu0 }
 0x384   :  { %v598_v15 = vadd.f32 %v681_v13, %v597_v14  ;;  %v809_v16 = vpop.f32.mrb[9].mxu0 }
 0x385   :  { %v600_v17 = vpop.f32.mrb[10].mxu0 }
 0x386   :  { %v603_v19 = vmax.f32 %v598_v15, 0.0  ;;  %v810_v20 = vpop.f32.mrb[11].mxu0 }
 0x388   :  { %v622_v21 = vmul.f32 %v688_v18, %v603_v19 }
 0x38a   :  { %v624_v22 = vsel %vm623_vm3, %v622_v21, 0.0 }
 0x38b   :  { %625 = vadd.xlane.f32.xlu0 %v624_v22 }
 0x418   :  { %v626_v25 = vpop.xlane.xlu0 %625 }
 0x419   :  { %v627_v26 = vadd.f32 %v626_v25, %v614_v23 }
 0x41b   :  { %v635_v27 = vadd.f32 %v689_v24, %v627_v26 }
 0x41d   :  { %v690_v28 = vmul.f32 -1.442695, %v635_v27 }
 0x41f   :  { %843 = vpow2.f32 %v690_v28 }
 0x429   :  { %v844_v29 = vpop.eup %843 }
 0x42a   :  { %v639_v30 = vadd.f32 1.0, %v844_v29 }
 0x42c   :  { %845 = vrcp.f32 %v639_v30 }
 0x436   :  { %v846_v31 = vpop.eup %845 }
 0x437   :  { %643 = vst.msk [vmem:[%s1138_s18] sm:$0xff] %vm642_vm4, %v846_v31 }

</bundles_post_ra>
